<compile_context>
chip_gen: v7x
topology: tpu7x:2x2x1
jax: 0.10.0
libtpu: 0.0.40
codegen_flags: <defaults>
</compile_context>

<pallas_src>
import functools

import jax
import jax.numpy as jnp
from jax.experimental import pallas as pl
from jax.experimental.pallas import tpu as pltpu


def _round_up(x, m):
    return (x + m - 1) // m * m


# --------------------------------------------------------------------------
# Pallas kernels
# --------------------------------------------------------------------------

def _matmul_fused_kernel(a_ref, b_ref, bias_ref, *rest, relu, has_res, multi_k):
    """bf16 A @ bf16 W (MXU, f32 accumulate) + folded-BN bias + optional bf16
    residual add (f32 math) + optional ReLU.  Output is written as bf16 on the
    last K step only; when K is tiled the accumulator lives in a VMEM f32
    scratch instead of the output block."""
    idx = 0
    res_ref = None
    if has_res:
        res_ref = rest[idx]
        idx += 1
    o_ref = rest[idx]
    idx += 1
    acc_ref = rest[idx] if multi_k else None

    def epilogue(acc):
        r = acc + bias_ref[...]                      # f32 epilogue
        if has_res:
            r = r + res_ref[...].astype(jnp.float32)
        if relu:
            r = jnp.maximum(r, 0.0)
        o_ref[...] = r.astype(o_ref.dtype)

    if not multi_k:
        # Single K step: no scratch, write the epilogue result directly.
        epilogue(jnp.dot(a_ref[...], b_ref[...],
                         preferred_element_type=jnp.float32))
        return

    k = pl.program_id(2)

    @pl.when(k == 0)
    def _():
        acc_ref[...] = jnp.zeros_like(acc_ref)

    acc_ref[...] += jnp.dot(a_ref[...], b_ref[...],
                            preferred_element_type=jnp.float32)

    @pl.when(k == pl.num_programs(2) - 1)
    def _():
        epilogue(acc_ref[...])


def _avgpool_fc_kernel(x_ref, w_ref, b_ref, o_ref, *, hw):
    """AdaptiveAvgPool2d((1,1)) + Linear fused: spatial mean (leading axis of
    x_ref) followed by one MXU matmul against the fc weights, bias in f32."""
    acc = x_ref[0].astype(jnp.float32)
    for i in range(1, hw):
        acc = acc + x_ref[i].astype(jnp.float32)
    feat = (acc * (1.0 / hw)).astype(jnp.bfloat16)
    o_ref[...] = (jnp.dot(feat, w_ref[...], preferred_element_type=jnp.float32)
                  + b_ref[...])


# --------------------------------------------------------------------------
# Pallas wrappers (padding / reshapes / im2col are plain-JAX glue under jit)
# --------------------------------------------------------------------------

def _pick_tiles(M, Kp, Np):
    """Tile selection: big tm (fewer M steps / weight re-fetches), tn matched
    to the MXU, tk = largest 128-multiple divisor of Kp fitting ~5 MB of A+B
    blocks (so most convs in this net use a single K grid step)."""
    tn = 256 if Np % 256 == 0 else 128
    tm = min(512, _round_up(M, 16))          # 16: bf16 sublane packing
    Mp = _round_up(M, tm)
    tk = 128
    t = Kp
    while t >= 128:
        if Kp % t == 0 and (tm * t + t * tn) * 2 <= 5 * 1024 * 1024:
            tk = t
            break
        t -= 128
    return tm, Mp, tk, tn


def matmul_bias(a, w_p, bias_p, n_out, relu=False, residual=None,
                out_dtype=jnp.bfloat16):
    """(M,K) @ pre-padded bf16 weights (Kp,Np) + bias[1,Np]; optional fused
    bf16 residual add and ReLU.  Returns out_dtype [M, n_out]."""
    M, K = a.shape
    Kp, Np = w_p.shape
    tm, Mp, tk, tn = _pick_tiles(M, Kp, Np)
    nk = Kp // tk
    multi_k = nk > 1

    a_p = jnp.pad(a.astype(jnp.bfloat16), ((0, Mp - M), (0, Kp - K)))

    inputs = [a_p, w_p, bias_p]
    in_specs = [
        pl.BlockSpec((tm, tk), lambda i, j, k: (i, k)),
        pl.BlockSpec((tk, tn), lambda i, j, k: (k, j)),
        pl.BlockSpec((1, tn), lambda i, j, k: (0, j)),
    ]
    has_res = residual is not None
    if has_res:
        res_p = jnp.pad(residual.astype(jnp.bfloat16),
                        ((0, Mp - M), (0, Np - residual.shape[1])))
        inputs.append(res_p)
        in_specs.append(pl.BlockSpec((tm, tn), lambda i, j, k: (i, j)))

    scratch = [pltpu.VMEM((tm, tn), jnp.float32)] if multi_k else []

    out = pl.pallas_call(
        functools.partial(_matmul_fused_kernel, relu=relu, has_res=has_res,
                          multi_k=multi_k),
        out_shape=jax.ShapeDtypeStruct((Mp, Np), out_dtype),
        grid_spec=pltpu.PrefetchScalarGridSpec(
            num_scalar_prefetch=0,
            grid=(Mp // tm, Np // tn, nk),
            in_specs=in_specs,
            out_specs=pl.BlockSpec((tm, tn), lambda i, j, k: (i, j)),
            scratch_shapes=scratch,
        ),
        compiler_params=pltpu.CompilerParams(
            dimension_semantics=("parallel", "parallel", "arbitrary"),
            vmem_limit_bytes=32 * 1024 * 1024),
    )(*inputs)
    return out[:M, :n_out]


def maxpool_3x3_s2(x):
    """MaxPool2d(kernel=3, stride=2, padding=1) on NHWC (bf16 in / bf16 out).
    Overlapping stride-2 windows are not BlockSpec-expressible, so this is a
    fused XLA max over the 9 strided views (no 9x HBM expansion)."""
    N, H, W, C = x.shape
    Ho = (H + 2 - 3) // 2 + 1
    Wo = (W + 2 - 3) // 2 + 1
    xp = jnp.pad(x, ((0, 0), (1, 1), (1, 1), (0, 0)),
                 constant_values=-jnp.inf)
    out = None
    for i in range(3):
        for j in range(3):
            v = xp[:, i:i + 2 * (Ho - 1) + 1:2, j:j + 2 * (Wo - 1) + 1:2, :]
            out = v if out is None else jnp.maximum(out, v)
    return out


def avgpool_fc(x, fc_w_p, fc_b_p, num_classes):
    """AdaptiveAvgPool2d((1,1)) + fc fused in one Pallas kernel.
    x: NHWC bf16; returns f32 [N, num_classes]."""
    N, H, W, C = x.shape
    hw = H * W
    Npad = _round_up(max(N, 8), 8)
    x3 = jnp.transpose(x.reshape(N, hw, C).astype(jnp.bfloat16), (1, 0, 2))
    x3 = jnp.pad(x3, ((0, 0), (0, Npad - N), (0, 0)))        # [hw, Npad, C]
    Np = fc_w_p.shape[1]
    vmem = pl.BlockSpec(memory_space=pltpu.MemorySpace.VMEM)
    out = pl.pallas_call(
        functools.partial(_avgpool_fc_kernel, hw=hw),
        out_shape=jax.ShapeDtypeStruct((Npad, Np), jnp.float32),
        in_specs=[vmem, vmem, vmem],
        out_specs=vmem,
    )(x3, fc_w_p, fc_b_p)
    return out[:N, :num_classes]


def _im2col(x, kh, kw, stride, pad):
    """NHWC bf16 -> [N*Ho*Wo, kh*kw*C] patches (K-index order: kh, kw, c)."""
    N, H, W, C = x.shape
    Ho = (H + 2 * pad - kh) // stride + 1
    Wo = (W + 2 * pad - kw) // stride + 1
    xp = jnp.pad(x, ((0, 0), (pad, pad), (pad, pad), (0, 0)))
    cols = []
    for i in range(kh):
        for j in range(kw):
            cols.append(xp[:, i:i + stride * (Ho - 1) + 1:stride,
                           j:j + stride * (Wo - 1) + 1:stride, :])
    patches = jnp.concatenate(cols, axis=-1)
    return patches.reshape(N * Ho * Wo, kh * kw * C), Ho, Wo


def conv_bn(x, w_p, b_p, cout, kh, kw, stride, pad, relu, residual=None):
    """Conv2d + folded BatchNorm (+ optional residual add) + optional ReLU.
    w_p: pre-padded bf16 [Kp, Np], b_p: f32 [1, Np].  bf16 in / bf16 out."""
    N = x.shape[0]
    a, Ho, Wo = _im2col(x.astype(jnp.bfloat16), kh, kw, stride, pad)
    res2 = None
    if residual is not None:
        res2 = residual.reshape(N * Ho * Wo, residual.shape[-1])
    y = matmul_bias(a, w_p, b_p, cout, relu=relu, residual=res2)
    return y.reshape(N, Ho, Wo, cout)


# --------------------------------------------------------------------------
# Deterministic synthetic ResNet-50 parameters (BN folded, pre-padded, bf16)
# --------------------------------------------------------------------------

CFG = ((64, 3, 1), (128, 4, 2), (256, 6, 2), (512, 3, 2))


def _pack_matmul_weights(w2d, b):
    """Pad K,N to multiples of 128 once, cast weight to bf16, bias stays f32."""
    K, N = w2d.shape
    Kp = _round_up(K, 128)
    Np = _round_up(N, 128)
    w_p = jnp.pad(w2d.astype(jnp.float32),
                  ((0, Kp - K), (0, Np - N))).astype(jnp.bfloat16)
    b_p = jnp.pad(b.astype(jnp.float32), (0, Np - N)).reshape(1, Np)
    return w_p, b_p


def _conv_bn_packed(key, cin, cout, k):
    k1, k2, k3, k4, k5 = jax.random.split(key, 5)
    w = jax.random.normal(k1, (k, k, cin, cout)) * jnp.sqrt(2.0 / (cin * k * k))
    gamma = 1.0 + 0.1 * jax.random.normal(k2, (cout,))
    beta = 0.1 * jax.random.normal(k3, (cout,))
    mean = 0.1 * jax.random.normal(k4, (cout,))
    var = jax.random.uniform(k5, (cout,), minval=0.5, maxval=1.5)
    scale = gamma / jnp.sqrt(var + 1e-5)
    w_f = w * scale                          # fold BN scale into conv
    b_f = beta - mean * scale
    return _pack_matmul_weights(w_f.reshape(k * k * cin, cout), b_f)


def make_resnet50_params(key, num_classes=25):
    keys = iter(jax.random.split(key, 200))
    params = {"stem": _conv_bn_packed(next(keys), 3, 64, 7), "layers": []}
    inplanes = 64
    for planes, blocks, _ in CFG:
        layer = []
        for b in range(blocks):
            blk = {
                "conv1": _conv_bn_packed(next(keys), inplanes, planes, 1),
                "conv2": _conv_bn_packed(next(keys), planes, planes, 3),
                "conv3": _conv_bn_packed(next(keys), planes, planes * 4, 1),
            }
            if b == 0:
                blk["down"] = _conv_bn_packed(next(keys), inplanes, planes * 4, 1)
            layer.append(blk)
            inplanes = planes * 4
        params["layers"].append(layer)
    kf1, kf2 = jax.random.split(next(keys))
    fc_w = jax.random.normal(kf1, (2048, num_classes)) * jnp.sqrt(1.0 / 2048)
    fc_b = 0.01 * jax.random.normal(kf2, (num_classes,))
    params["fc"] = _pack_matmul_weights(fc_w, fc_b)
    return params


# --------------------------------------------------------------------------
# Forward pass (AcneClassifier.forward == resnet50 with fc -> num_classes)
# --------------------------------------------------------------------------

@functools.partial(jax.jit, static_argnames=("num_classes",))
def acne_classifier_forward(params, x_nchw, num_classes=25):
    # NCHW -> NHWC; the whole activation stream runs in bf16 between kernels.
    x = jnp.transpose(x_nchw, (0, 2, 3, 1)).astype(jnp.bfloat16)

    # stem: conv7x7/s2 + BN + ReLU + maxpool3x3/s2
    w, b = params["stem"]
    x = conv_bn(x, w, b, cout=64, kh=7, kw=7, stride=2, pad=3, relu=True)
    x = maxpool_3x3_s2(x)

    # 4 bottleneck stages
    for li, (planes, blocks, stride) in enumerate(CFG):
        layer = params["layers"][li]
        for bi in range(blocks):
            blk = layer[bi]
            s = stride if bi == 0 else 1
            if bi == 0:
                wd, bd = blk["down"]
                identity = conv_bn(x, wd, bd, cout=planes * 4, kh=1, kw=1,
                                   stride=s, pad=0, relu=False)
            else:
                identity = x
            w1, b1 = blk["conv1"]
            out = conv_bn(x, w1, b1, cout=planes, kh=1, kw=1,
                          stride=1, pad=0, relu=True)
            w2, b2 = blk["conv2"]
            out = conv_bn(out, w2, b2, cout=planes, kh=3, kw=3,
                          stride=s, pad=1, relu=True)
            w3, b3 = blk["conv3"]
            # residual add + ReLU fused into the conv3 matmul epilogue
            x = conv_bn(out, w3, b3, cout=planes * 4, kh=1, kw=1,
                        stride=1, pad=0, relu=True, residual=identity)

    # fused global average pool + fc -> logits
    fc_w, fc_b = params["fc"]
    logits = avgpool_fc(x, fc_w, fc_b, num_classes)           # [N, num_classes]
    return logits


if __name__ == "__main__":
    key = jax.random.PRNGKey(0)
    pkey, xkey = jax.random.split(key)
    params = make_resnet50_params(pkey, num_classes=25)
    # NCHW input consistent with the module: 3 channels, 64x64 spatial, batch 2
    x = jax.random.normal(xkey, (2, 3, 64, 64), dtype=jnp.float32)

    # quick numerics self-check of the fused Pallas matmul vs plain-JAX (bf16 inputs)
    ka, kb, kc = jax.random.split(jax.random.PRNGKey(1), 3)
    at = jax.random.normal(ka, (96, 200), dtype=jnp.float32)
    bt = jax.random.normal(kb, (200, 70), dtype=jnp.float32)
    ct = jax.random.normal(kc, (70,), dtype=jnp.float32)
    wp, bp = _pack_matmul_weights(bt, ct)
    got = matmul_bias(at, wp, bp, 70, relu=True, out_dtype=jnp.float32)
    ref = jnp.maximum(
        jnp.dot(at.astype(jnp.bfloat16).astype(jnp.float32),
                bt.astype(jnp.bfloat16).astype(jnp.float32),
                preferred_element_type=jnp.float32) + ct, 0.0)
    assert float(jnp.max(jnp.abs(got - ref))) < 0.25, "fused matmul mismatch"

    logits = acne_classifier_forward(params, x, num_classes=25)
    logits = jax.block_until_ready(logits)
    assert logits.shape == (2, 25)
    assert bool(jnp.all(jnp.isfinite(logits)))
    print("KERNEL_OK")
</pallas_src>

<mosaic_0001>
module attributes {stable_mosaic.version = 11 : i64} {
  func.func @_matmul_fused_kernel(%arg0: i32, %arg1: i32, %arg2: i32, %arg3: memref<96x256xbf16, #tpu.memory_space<vmem>>, %arg4: memref<256x128xbf16, #tpu.memory_space<vmem>>, %arg5: memref<1x128xf32, #tpu.memory_space<vmem>>, %arg6: memref<96x128xf32, #tpu.memory_space<vmem>>) attributes {dimension_semantics = [#tpu.dimension_semantics<parallel>, #tpu.dimension_semantics<parallel>, #tpu.dimension_semantics<arbitrary>], iteration_bounds = array<i64: 1, 1, 1>, scalar_prefetch = 0 : i64, scratch_operands = 0 : i64, tpu.core_type = #tpu.core_type<tc>, window_params = [{transform_indices = @transform_0, window_bounds = array<i64: 96, 256>}, {transform_indices = @transform_1, window_bounds = array<i64: 256, 128>}, {transform_indices = @transform_2, window_bounds = array<i64: 1, 128>}, {transform_indices = @transform_3, window_bounds = array<i64: 96, 128>}]} {
    %c0 = arith.constant 0 : index
    %c0_0 = arith.constant 0 : index
    %0 = vector.load %arg3[%c0, %c0_0] : memref<96x256xbf16, #tpu.memory_space<vmem>>, vector<96x256xbf16>
    %c0_1 = arith.constant 0 : index
    %c0_2 = arith.constant 0 : index
    %1 = vector.load %arg4[%c0_1, %c0_2] : memref<256x128xbf16, #tpu.memory_space<vmem>>, vector<256x128xbf16>
    %cst = arith.constant dense<0.000000e+00> : vector<96x128xf32>
    %2 = tpu.matmul %0, %1, %cst {dimension_numbers = #tpu.dot_dimension_numbers<[1], [0], [0], [1], [0, 0, 1, 1], [], []>} : vector<96x256xbf16>, vector<256x128xbf16>, vector<96x128xf32> -> vector<96x128xf32>
    %c0_3 = arith.constant 0 : index
    %c0_4 = arith.constant 0 : index
    %3 = vector.load %arg5[%c0_3, %c0_4] : memref<1x128xf32, #tpu.memory_space<vmem>>, vector<1x128xf32>
    %4 = vector.broadcast %3 : vector<1x128xf32> to vector<96x128xf32>
    %5 = arith.addf %2, %4 : vector<96x128xf32>
    %cst_5 = arith.constant 0.000000e+00 : f32
    %6 = vector.broadcast %cst_5 : f32 to vector<96x128xf32>
    %7 = arith.maximumf %5, %6 : vector<96x128xf32>
    %c0_6 = arith.constant 0 : index
    %c0_7 = arith.constant 0 : index
    %8 = vector.load %arg6[%c0_6, %c0_7] : memref<96x128xf32, #tpu.memory_space<vmem>>, vector<96x128xf32>
    tpu.vector_store %arg6[%c0_6, %c0_7], %7 {strides = array<i32>} : memref<96x128xf32, #tpu.memory_space<vmem>>, vector<96x128xf32>,
    return
  }
  func.func @transform_0(%arg0: i32, %arg1: i32, %arg2: i32) -> (i32, i32) {
    %c0_i32 = arith.constant 0 : i32
    return %arg0, %arg2 : i32, i32
  }
  func.func @transform_1(%arg0: i32, %arg1: i32, %arg2: i32) -> (i32, i32) {
    %c0_i32 = arith.constant 0 : i32
    return %arg2, %arg1 : i32, i32
  }
  func.func @transform_2(%arg0: i32, %arg1: i32, %arg2: i32) -> (i32, i32) {
    %c0_i32 = arith.constant 0 : i32
    %c0_i32_0 = arith.constant 0 : i32
    return %c0_i32, %arg1 : i32, i32
  }
  func.func @transform_3(%arg0: i32, %arg1: i32, %arg2: i32) -> (i32, i32) {
    %c0_i32 = arith.constant 0 : i32
    return %arg0, %arg1 : i32, i32
  }
}

</mosaic_0001>

<bundles_post_ra>
// kernel: tpu_custom_call.1
= control target key start
LH: loop header
LB: loop body
LE: loop exit
PB: predicated region body
PF: predicated region fallthrough
CT: control target
= control target key end

     0   :  { %8 = vsyncpa [#allocation3], 0  ;;  %s670_s0 = inlined_call_operand.hbm [shape: bf16[96,256], index: 0, kind: input, shape index: {}]   ;;  %s671_s1 = inlined_call_operand.hbm [shape: bf16[256,128], index: 1, kind: input, shape index: {}]   ;;  %s672_s2 = inlined_call_operand.vmem [shape: f32[1,128], index: 2, kind: input, shape index: {}]   ;;  %s673_s3 = inlined_call_operand.hbm [shape: f32[96,128], index: 3, kind: output, shape index: {}]  }
   0x1   :  { %9 = vsyncpa [#allocation6], 0 }
   0x2   :  { %10 = vsyncpa [#allocation4], 0  ;;  %s584_s12 = smov [#allocation2]   ;;  %s512_s16 = scalar_lea.hbm %s670_s0, 1536 }
   0x3   :  { %s16_s13 = sshll.u32 %s584_s12, 4  ;;  %p513_p0 = scmp.ne.s32.totalorder %s670_s0, %s512_s16  ;;  %s17_s13 = int_to_ptr.vmem [resolvable:$true] %s16_s13 }
   0x4   :  { %p516_p1 = scmp.lt.u32.totalorder %s512_s16, %s670_s0 }
   0x6   :  { %p518_p2 = pnand %p516_p1, %p513_p0 }
   0x8   :  { %521 = shalt.err (!%p518_p2)
}
   0x9   :  { %s522_s21 = scalar_lea.vmem %s17_s13, 1536  ;;  %p527_p4 = scmp.lt.s32.totalorder %s17_s13, %s17_s13 }
   0xa   :  { %p523_p3 = scmp.ne.s32.totalorder %s17_s13, %s522_s21  ;;  %p528_p5 = scmp.lt.s32.totalorder %s522_s21, %s522_s21 }
   0xc   :  { %p529_p6 = por %p528_p5, %p527_p4 }
   0xe   :  { %p530_p7 = pnand %p529_p6, %p523_p3 }
  0x10   :  { %533 = shalt.err (!%p530_p7)
}
  0x11   :  { %s585_s22 = smov 128   ;;  %s586_s23 = smov 8  }
  0x12   :  { %22 = dma.hbm_to_vmem [thread:$0]  %s670_s0, 1536, %s17_s13, [#allocation3], %s585_s22, %s585_s22, %s586_s23  }
  0x13   :  { %s587_s26 = smov [#allocation5]   ;;  %s534_s30 = scalar_lea.hbm %s671_s1, 2048 }
  0x14   :  { %s28_s27 = sshll.u32 %s587_s26, 4  ;;  %p535_p8 = scmp.ne.s32.totalorder %s671_s1, %s534_s30  ;;  %s29_s27 = int_to_ptr.vmem [resolvable:$true] %s28_s27 }
  0x15   :  { %p538_p9 = scmp.lt.u32.totalorder %s534_s30, %s671_s1 }
  0x17   :  { %p540_p10 = pnand %p538_p9, %p535_p8 }
  0x19   :  { %543 = shalt.err (!%p540_p10)
}
  0x1a   :  { %s544_s8 = scalar_lea.vmem %s29_s27, 2048  ;;  %p549_p12 = scmp.lt.s32.totalorder %s29_s27, %s29_s27 }
  0x1b   :  { %p545_p11 = scmp.ne.s32.totalorder %s29_s27, %s544_s8  ;;  %p550_p13 = scmp.lt.s32.totalorder %s544_s8, %s544_s8 }
  0x1d   :  { %p551_p0 = por %p550_p13, %p549_p12 }
  0x1f   :  { %p552_p1 = pnand %p551_p0, %p545_p11 }
  0x21   :  { %555 = shalt.err (!%p552_p1)
}
  0x22   :  { %s588_s0 = smov 64   ;;  %s589_s9 = smov 4  }
  0x23   :  { %34 = dma.hbm_to_vmem [thread:$0]  %s671_s1, 2048, %s29_s27, [#allocation6], %s588_s0, %s588_s0, %s589_s9  }
  0x24   :  { %578 = dma.done.wait [#allocation3], 1536  }
  0x25   :  { %579 = vsyncadd [#allocation3], 4294965760 }
  0x26   :  { %580 = dma.done.wait [#allocation6], 2048  }
  0x27   :  { %581 = vsyncadd [#allocation6], 4294965248  ;;  %v478_v0 = vld [vmem:[#allocation5 + $0x40] sm:$0xff]   ;;  %v480_v2 = vld [vmem:[#allocation5 + $0x48] sm:$0xff]  }
  0x28   :  { %v479_v1 = vld [vmem:[#allocation5] sm:$0xff]   ;;  %403 = vmatprep.subr.bf16.mxu0 %v478_v0  ;;  %455 = vmatprep.subr.bf16.mxu1 %v478_v0  ;;  %v481_v3 = vld [vmem:[#allocation5 + $0x8] sm:$0xff]   ;;  %v482_v4 = vld [vmem:[#allocation5 + $0x50] sm:$0xff]  }
  0x29   :  { %404 = vmatpush3.bf16.msra.mxu0 %v479_v1  ;;  %463 = vmatpush3.bf16.msra.mxu1 %v479_v1  ;;  %v483_v5 = vld [vmem:[#allocation5 + $0x10] sm:$0xff]   ;;  %v484_v6 = vld [vmem:[#allocation5 + $0x58] sm:$0xff]   ;;  %v486_v8 = vld [vmem:[#allocation5 + $0x60] sm:$0xff]  }
  0x2a   :  { %405 = vmatprep.subr.bf16.mxu0 %v480_v2  ;;  %456 = vmatprep.subr.bf16.mxu1 %v480_v2  ;;  %v485_v7 = vld [vmem:[#allocation5 + $0x18] sm:$0xff]   ;;  %v487_v9 = vld [vmem:[#allocation5 + $0x20] sm:$0xff]   ;;  %v488_v10 = vld [vmem:[#allocation5 + $0x68] sm:$0xff]  }
  0x2b   :  { %v496_v11 = vld [vmem:[#allocation2 + $0x4] ss:$8 sps:$4 sm:$0xff]   ;;  %v499_v12 = vld [vmem:[#allocation2 + $0x34] ss:$8 sps:$4 sm:$0xff]   ;;  %v494_v18 = vld [vmem:[#allocation2] ss:$8 sps:$4 sm:$0xff]  }
  0x2c   :  { %v489_v13 = vld [vmem:[#allocation5 + $0x28] sm:$0xff]   ;;  %v490_v14 = vld [vmem:[#allocation5 + $0x70] sm:$0xff]   ;;  %283 = vmatprep.mubr.bf16.mxu0 %v496_v11  ;;  %307 = vmatprep.mubr.bf16.mxu1 %v499_v12  ;;  %v492_v16 = vld [vmem:[#allocation5 + $0x78] sm:$0xff]  }
  0x2d   :  { %406 = vmatpush3.bf16.msra.mxu0 %v481_v3  ;;  %464 = vmatpush3.bf16.msra.mxu1 %v481_v3  ;;  %v491_v15 = vld [vmem:[#allocation5 + $0x30] sm:$0xff]   ;;  %v493_v17 = vld [vmem:[#allocation5 + $0x38] sm:$0xff]   ;;  %v502_v21 = vld [vmem:[#allocation2 + $0x44] ss:$8 sps:$4 sm:$0xff]  }
  0x2e   :  { %407 = vmatprep.subr.bf16.mxu0 %v482_v4  ;;  %457 = vmatprep.subr.bf16.mxu1 %v482_v4  ;;  %v497_v19 = vld [vmem:[#allocation2 + $0x30] ss:$8 sps:$4 sm:$0xff]   ;;  %v500_v20 = vld [vmem:[#allocation2 + $0x14] ss:$8 sps:$4 sm:$0xff]   ;;  %v505_v23 = vld [vmem:[#allocation2 + $0x40] ss:$8 sps:$4 sm:$0xff]  }
  0x2f   :  { %v504_v22 = vld [vmem:[#allocation2 + $0x10] ss:$8 sps:$4 sm:$0xff]   ;;  %v506_v24 = vld [vmem:[#allocation2 + $0x24] ss:$8 sps:$4 sm:$0xff]   ;;  %v508_v25 = vld [vmem:[#allocation2 + $0x54] ss:$8 sps:$4 sm:$0xff]  }
  0x30   :  { %v510_v26 = vld [vmem:[#allocation2 + $0x20] ss:$8 sps:$4 sm:$0xff]   ;;  %v511_v27 = vld [vmem:[#allocation2 + $0x50] ss:$8 sps:$4 sm:$0xff]  }
  0x31   :  { %408 = vmatpush3.bf16.msra.mxu0 %v483_v5  ;;  %465 = vmatpush3.bf16.msra.mxu1 %v483_v5  ;;  %v641_v30 = vld [vmem:[%s672_s2] ss:$0 sm:$0xff]  ;;  %s590_s2 = smov [#allocation7]  }
  0x32   :  { %409 = vmatprep.subr.bf16.mxu0 %v484_v6  ;;  %458 = vmatprep.subr.bf16.mxu1 %v484_v6  ;;  %s361_s13 = sshll.u32 %s590_s2, 4  ;;  %s362_s13 = int_to_ptr.vmem [resolvable:$true] %s361_s13 }
  0x33   :  { %s556_s14 = scalar_lea.vmem %s362_s13, 1536  ;;  %p561_p3 = scmp.lt.s32.totalorder %s362_s13, %s362_s13 }
  0x34   :  { %p557_p2 = scmp.ne.s32.totalorder %s362_s13, %s556_s14  ;;  %p562_p4 = scmp.lt.s32.totalorder %s556_s14, %s556_s14 }
  0x35   :  { %410 = vmatpush3.bf16.msra.mxu0 %v485_v7  ;;  %466 = vmatpush3.bf16.msra.mxu1 %v485_v7 }
  0x36   :  { %411 = vmatprep.subr.bf16.mxu0 %v486_v8  ;;  %459 = vmatprep.subr.bf16.mxu1 %v486_v8  ;;  %p563_p5 = por %p562_p4, %p561_p3 }
  0x38   :  { %p564_p6 = pnand %p563_p5, %p557_p2 }
  0x39   :  { %412 = vmatpush3.bf16.msra.mxu0 %v487_v9  ;;  %467 = vmatpush3.bf16.msra.mxu1 %v487_v9 }
  0x3a   :  { %413 = vmatprep.subr.bf16.mxu0 %v488_v10  ;;  %460 = vmatprep.subr.bf16.mxu1 %v488_v10 }
  0x3d   :  { %414 = vmatpush3.bf16.msra.mxu0 %v489_v13  ;;  %468 = vmatpush3.bf16.msra.mxu1 %v489_v13 }
  0x3e   :  { %415 = vmatprep.subr.bf16.mxu0 %v490_v14  ;;  %461 = vmatprep.subr.bf16.mxu1 %v490_v14 }
  0x41   :  { %416 = vmatpush3.bf16.msra.mxu0 %v491_v15  ;;  %469 = vmatpush3.bf16.msra.mxu1 %v491_v15 }
  0x42   :  { %417 = vmatprep.subr.bf16.mxu0 %v492_v16  ;;  %462 = vmatprep.subr.bf16.mxu1 %v492_v16 }
  0x45   :  { %418 = vmatpush3.bf16.msra.mxu0 %v493_v17  ;;  %470 = vmatpush3.bf16.msra.mxu1 %v493_v17 }
  0x48   :  { %284 = vmatmul.mubr.bf16.vlgmr.msra.gmra.mrb[0].mxu0 %v494_v18  ;;  %308 = vmatmul.mubr.bf16.vlgmr.msra.gmra.mrb[0].mxu1 %v497_v19 }
  0x49   :  { %291 = vmatprep.mubr.bf16.mxu0 %v500_v20  ;;  %315 = vmatprep.mubr.bf16.mxu1 %v502_v21 }
  0x50   :  { %292 = vmatmul.mubr.bf16.gmra.mrb[4].mxu0 %v504_v22  ;;  %316 = vmatmul.mubr.bf16.gmra.mrb[4].mxu1 %v505_v23 }
  0x51   :  { %299 = vmatprep.mubr.bf16.mxu0 %v506_v24  ;;  %323 = vmatprep.mubr.bf16.mxu1 %v508_v25 }
  0x58   :  { %300 = vmatmul.mubr.bf16.gmra.mrb[8].mxu0 %v510_v26  ;;  %324 = vmatmul.mubr.bf16.gmra.mrb[8].mxu1 %v511_v27 }
 0x11b   :  { %v419_v28 = vpop.f32.mrb[0].mxu0  ;;  %v437_v29 = vpop.f32.mrb[0].mxu1 }
 0x11c   :  { %v420_v31 = vpop.f32.mrb[1].mxu0  ;;  %v438_v32 = vpop.f32.mrb[1].mxu1 }
 0x11d   :  { %v421_v33 = vadd.f32 %v420_v31, %v419_v28  ;;  %v439_v34 = vadd.f32 %v438_v32, %v437_v29  ;;  %v422_v35 = vpop.f32.mrb[2].mxu0  ;;  %v440_v36 = vpop.f32.mrb[2].mxu1 }
 0x11e   :  { %v423_v37 = vpop.f32.mrb[3].mxu0  ;;  %v441_v38 = vpop.f32.mrb[3].mxu1 }
 0x11f   :  { %v286_v39 = vadd.f32 %v421_v33, %v641_v30  ;;  %v310_v40 = vadd.f32 %v439_v34, %v641_v30  ;;  %v424_v41 = vadd.f32 %v423_v37, %v422_v35  ;;  %v442_v42 = vadd.f32 %v441_v38, %v440_v36 }
 0x121   :  { %v332_v43 = vmax.f32 %v286_v39, 0.0  ;;  %v338_v44 = vmax.f32 %v310_v40, 0.0  ;;  %v289_v45 = vadd.f32 %v424_v41, %v641_v30  ;;  %v313_v46 = vadd.f32 %v442_v42, %v641_v30 }
 0x123   :  { %344 = vst [vmem:[#allocation7] sm:$0xff] %v332_v43  ;;  %350 = vst [vmem:[#allocation7 + $0x30] sm:$0xff] %v338_v44  ;;  %v333_v47 = vmax.f32 %v289_v45, 0.0  ;;  %v339_v48 = vmax.f32 %v313_v46, 0.0  ;;  %v425_v49 = vpop.f32.mrb[4].mxu0  ;;  %v443_v50 = vpop.f32.mrb[4].mxu1 }
 0x124   :  { %v426_v51 = vpop.f32.mrb[5].mxu0  ;;  %v444_v52 = vpop.f32.mrb[5].mxu1 }
 0x125   :  { %345 = vst [vmem:[#allocation7 + $0x8] sm:$0xff] %v333_v47  ;;  %351 = vst [vmem:[#allocation7 + $0x38] sm:$0xff] %v339_v48  ;;  %v427_v53 = vadd.f32 %v426_v51, %v425_v49  ;;  %v445_v54 = vadd.f32 %v444_v52, %v443_v50  ;;  %v428_v55 = vpop.f32.mrb[6].mxu0  ;;  %v446_v56 = vpop.f32.mrb[6].mxu1 }
 0x126   :  { %v429_v57 = vpop.f32.mrb[7].mxu0  ;;  %v447_v58 = vpop.f32.mrb[7].mxu1 }
 0x127   :  { %v294_v59 = vadd.f32 %v427_v53, %v641_v30  ;;  %v318_v60 = vadd.f32 %v445_v54, %v641_v30  ;;  %v430_v61 = vadd.f32 %v429_v57, %v428_v55  ;;  %v448_v62 = vadd.f32 %v447_v58, %v446_v56 }
 0x129   :  { %v334_v63 = vmax.f32 %v294_v59, 0.0  ;;  %v340_v0 = vmax.f32 %v318_v60, 0.0  ;;  %v297_v1 = vadd.f32 %v430_v61, %v641_v30  ;;  %v321_v2 = vadd.f32 %v448_v62, %v641_v30 }
 0x12b   :  { %346 = vst [vmem:[#allocation7 + $0x10] sm:$0xff] %v334_v63  ;;  %352 = vst [vmem:[#allocation7 + $0x40] sm:$0xff] %v340_v0  ;;  %v335_v3 = vmax.f32 %v297_v1, 0.0  ;;  %v341_v4 = vmax.f32 %v321_v2, 0.0  ;;  %v431_v5 = vpop.f32.mrb[8].mxu0  ;;  %v449_v6 = vpop.f32.mrb[8].mxu1 }
 0x12c   :  { %v432_v7 = vpop.f32.mrb[9].mxu0  ;;  %v450_v8 = vpop.f32.mrb[9].mxu1 }
 0x12d   :  { %347 = vst [vmem:[#allocation7 + $0x18] sm:$0xff] %v335_v3  ;;  %353 = vst [vmem:[#allocation7 + $0x48] sm:$0xff] %v341_v4  ;;  %v433_v9 = vadd.f32 %v432_v7, %v431_v5  ;;  %v451_v10 = vadd.f32 %v450_v8, %v449_v6  ;;  %v434_v11 = vpop.f32.mrb[10].mxu0  ;;  %v452_v12 = vpop.f32.mrb[10].mxu1 }
 0x12e   :  { %v435_v13 = vpop.f32.mrb[11].mxu0  ;;  %v453_v14 = vpop.f32.mrb[11].mxu1 }
 0x12f   :  { %v302_v15 = vadd.f32 %v433_v9, %v641_v30  ;;  %v326_v16 = vadd.f32 %v451_v10, %v641_v30  ;;  %v436_v17 = vadd.f32 %v435_v13, %v434_v11  ;;  %v454_v18 = vadd.f32 %v453_v14, %v452_v12 }
 0x131   :  { %v336_v19 = vmax.f32 %v302_v15, 0.0  ;;  %v342_v20 = vmax.f32 %v326_v16, 0.0  ;;  %v305_v21 = vadd.f32 %v436_v17, %v641_v30  ;;  %v329_v22 = vadd.f32 %v454_v18, %v641_v30 }
 0x133   :  { %348 = vst [vmem:[#allocation7 + $0x20] sm:$0xff] %v336_v19  ;;  %354 = vst [vmem:[#allocation7 + $0x50] sm:$0xff] %v342_v20  ;;  %v337_v23 = vmax.f32 %v305_v21, 0.0  ;;  %v343_v24 = vmax.f32 %v329_v22, 0.0 }
 0x135   :  { %349 = vst [vmem:[#allocation7 + $0x28] sm:$0xff] %v337_v23  ;;  %355 = vst [vmem:[#allocation7 + $0x58] sm:$0xff] %v343_v24 }
 0x136   :  { %567 = shalt.err (!%p564_p6)
}
 0x137   :  { %s568_s17 = scalar_lea.hbm %s673_s3, 1536 }
 0x138   :  { %p569_p7 = scmp.ne.s32.totalorder %s673_s3, %s568_s17  ;;  %p572_p8 = scmp.lt.u32.totalorder %s568_s17, %s673_s3 }
 0x13a   :  { %p574_p9 = pnand %p572_p8, %p569_p7 }
 0x13c   :  { %577 = shalt.err (!%p574_p9)
}
 0x13d   :  { %367 = dma.vmem_to_hbm [thread:$0]  %s362_s13, 1536, %s673_s3, [#allocation4], %s585_s22, %s585_s22, %s586_s23  }
 0x13e   :  { %582 = dma.done.wait [#allocation4], 1536  }
 0x13f   :  { %583 = vsyncadd [#allocation4], 4294965760 }
 0x140   :  { %371 = vsyncpa [#allocation3], 1 }
 0x141   :  { %372 = vsyncpa [#allocation6], 1 }
 0x142   :  { %373 = vsyncpa [#allocation4], 1 }

</bundles_post_ra>
